<compile_context>
chip_gen: v5e
topology: v5e:2x2
jax: 0.10.0
libtpu: 0.0.40
codegen_flags: <defaults>
</compile_context>

<pallas_src>
import functools

import jax
import jax.numpy as jnp
from jax import lax
from jax.experimental import pallas as pl
from jax.experimental.pallas import tpu as pltpu

_LANE = 128


def _round_up(x, m):
    return ((x + m - 1) // m) * m


# ---------------------------------------------------------------------------
# Pallas kernel: per-view 1x1-conv matmuls + in-kernel sum-minus-own aggregation
# ---------------------------------------------------------------------------
def _gemi_fused_kernel(x_ref, w_ref, b_ref, out_ref, *, K, Cin, Cout,
                       lane_chunk, compute_dtype):
    """Per (batch, hw-tile) block.

    x_ref:   (1, K*Cin, THW)    input dtype (f32, cast in-kernel if needed)
    w_ref:   (K, 2*Cout, Cin)   per-view fused [siam; agg] weights (compute dtype)
    b_ref:   (K, 2*Cout, 1)     per-view fused biases, f32
    out_ref: (1, 2*K*Cout, THW) rows = [siam_0..siam_{K-1}, aggd_0..aggd_{K-1}]
                                where aggd_k = sum_j agg_j - agg_k
    """
    KC = K * Cout
    thw = out_ref.shape[-1]
    n_chunks = thw // lane_chunk

    def chunk_body(c, carry):
        if isinstance(c, int):
            start = c * lane_chunk
        else:
            start = pl.multiple_of(c * lane_chunk, lane_chunk)

        # One lane-dense load of the whole input chunk (K*Cin rows).
        x_chunk = x_ref[0, :, pl.ds(start, lane_chunk)].astype(compute_dtype)

        sims, aggs = [], []
        for k in range(K):
            # Small dense per-view matmul: (2*Cout, Cin) @ (Cin, lane_chunk),
            # f32 accumulation, f32 bias add.
            yk = jnp.dot(w_ref[k], x_chunk[k * Cin:(k + 1) * Cin, :],
                         preferred_element_type=jnp.float32) + b_ref[k]
            sims.append(yk[:Cout, :])
            aggs.append(yk[Cout:, :])

        # Lane-dense siam stores (row offsets are multiples of Cout).
        for k in range(K):
            out_ref[0, k * Cout:(k + 1) * Cout, pl.ds(start, lane_chunk)] = (
                sims[k].astype(out_ref.dtype))

        # Aggregation: sum over views minus own view.
        if K == 2:
            # Degenerates to a swap -> no adds/subtracts on the critical path.
            out_ref[0, KC:KC + Cout, pl.ds(start, lane_chunk)] = (
                aggs[1].astype(out_ref.dtype))
            out_ref[0, KC + Cout:KC + 2 * Cout, pl.ds(start, lane_chunk)] = (
                aggs[0].astype(out_ref.dtype))
        else:
            agg_sum = aggs[0]
            for k in range(1, K):
                agg_sum = agg_sum + aggs[k]
            for k in range(K):
                out_ref[0, KC + k * Cout:KC + (k + 1) * Cout,
                        pl.ds(start, lane_chunk)] = (
                    (agg_sum - aggs[k]).astype(out_ref.dtype))
        return carry

    if n_chunks == 1:
        chunk_body(0, None)
    else:
        lax.fori_loop(0, n_chunks, chunk_body, None, unroll=(n_chunks <= 8))


# ---------------------------------------------------------------------------
# Wrappers
# ---------------------------------------------------------------------------
def _pick_hw_tile(hw, rows_in, rows_out, in_bytes, out_bytes,
                  vmem_step_budget=24 * 2**20, max_tile=32768):
    """Lane-axis tile: a multiple of 128, sized from a per-step (double-
    buffered) VMEM budget, capped so it stays comfortable on v7x (64 MiB)."""
    hw128 = _round_up(hw, _LANE)
    bytes_per_lane = 2 * (rows_in * in_bytes + rows_out * out_bytes)  # x2 = double buffer
    budget_tile = max(_LANE, (vmem_step_budget // bytes_per_lane) // _LANE * _LANE)
    return min(hw128, budget_tile, max_tile)


def gemi_conv_agg(x_flat, w, b, K, Cin, Cout, *, compute_dtype=jnp.float32,
                  out_dtype=jnp.float32, hw_tile=None):
    """x_flat: (B, K*Cin, HW) f32 (NO wrapper-side cast; cast happens in-kernel).
    w: (K, 2*Cout, Cin) rows = [siam; agg] per view; b: (K, 2*Cout).
    Returns one (B, 2*K*Cout, HW) array: [siam_0..K-1, aggd_0..K-1]."""
    B, KCin, HW = x_flat.shape
    KC = K * Cout
    rows_out = 2 * KC
    in_bytes = x_flat.dtype.itemsize
    out_bytes = jnp.dtype(out_dtype).itemsize

    if hw_tile is None:
        thw = _pick_hw_tile(HW, KCin, rows_out, in_bytes, out_bytes)
    else:
        assert hw_tile % _LANE == 0, "hw_tile must be a multiple of 128"
        thw = hw_tile

    hw_pad = _round_up(HW, thw)
    # v7x has 2 TensorCores per chip: keep >= 2 programs on the parallel grid.
    if B * (hw_pad // thw) < 2 and thw >= 2 * _LANE:
        thw //= 2
        hw_pad = _round_up(HW, thw)
    n_hw = hw_pad // thw

    if hw_pad != HW:
        # Pad to a multiple of the tile: lane-dense (unmasked) stores, no
        # dropped spatial tail.  Padding is sliced off below.
        x_flat = jnp.pad(x_flat, ((0, 0), (0, 0), (0, hw_pad - HW)))

    # Inner lane-chunk size: bounds vreg live ranges inside a large block.
    if thw % 512 == 0:
        lane_chunk = 512
    elif thw % 256 == 0:
        lane_chunk = 256
    else:
        lane_chunk = _LANE

    w_c = w.astype(compute_dtype)                  # tiny -> cast in wrapper
    b_f32 = b.reshape(K, 2 * Cout, 1).astype(jnp.float32)

    kernel = functools.partial(_gemi_fused_kernel, K=K, Cin=Cin, Cout=Cout,
                               lane_chunk=lane_chunk,
                               compute_dtype=compute_dtype)

    # Per-step double-buffered footprint -> explicit, footprint-derived VMEM limit.
    step_bytes = 2 * thw * (KCin * in_bytes + rows_out * out_bytes)
    step_bytes += w_c.size * w_c.dtype.itemsize + b_f32.size * 4
    vmem_limit = int(min(96 * 2**20, max(8 * 2**20, 2 * step_bytes)))

    out = pl.pallas_call(
        kernel,
        out_shape=jax.ShapeDtypeStruct((B, rows_out, hw_pad), out_dtype),
        grid_spec=pltpu.PrefetchScalarGridSpec(
            num_scalar_prefetch=0,
            grid=(B, n_hw),
            in_specs=[
                pl.BlockSpec((1, KCin, thw), lambda bi, t: (bi, 0, t)),
                pl.BlockSpec((K, 2 * Cout, Cin), lambda bi, t: (0, 0, 0)),
                pl.BlockSpec((K, 2 * Cout, 1), lambda bi, t: (0, 0, 0)),
            ],
            out_specs=pl.BlockSpec((1, rows_out, thw), lambda bi, t: (bi, 0, t)),
        ),
        compiler_params=pltpu.CompilerParams(
            dimension_semantics=("parallel", "parallel"),
            vmem_limit_bytes=vmem_limit),
    )(x_flat, w_c, b_f32)

    return out[:, :, :HW]


def symmetrize(x, group):
    """x: (B, C, H, W) channels-first. Group-orbit averaging."""
    if group == "rot90":
        return (x
                + jnp.rot90(x, 1, axes=(2, 3))
                + jnp.rot90(x, 2, axes=(2, 3))
                + jnp.rot90(x, 3, axes=(2, 3))) * 0.25
    elif group == "hflip":
        return (x + jnp.flip(x, axis=3)) * 0.5
    raise NotImplementedError(group)


def gemi_layer_forward(x, params, list_symmetry_groups=("rot90", "hflip"),
                       compute_dtype=jnp.float32, out_dtype=jnp.float32):
    """x: (B, K, Cin, H, W) channels-first (PyTorch layout).
    params: (w1, b1, w2, b2) with w*: (K, Cin, Cout), b*: (K, Cout).
    Returns (B, K, Cout, H, W) f32."""
    B, K, Cin, H, W = x.shape
    assert K == len(list_symmetry_groups), (
        "number of views K must equal len(list_symmetry_groups)")
    w1, b1, w2, b2 = params
    Cout = w1.shape[-1]

    # Per-view fused [siam; agg] weights: (K, 2*Cout, Cin) — no zero blocks.
    w = jnp.concatenate(
        [jnp.swapaxes(w1, 1, 2), jnp.swapaxes(w2, 1, 2)], axis=1)
    b = jnp.concatenate([b1, b2], axis=1)

    x_flat = x.reshape(B, K * Cin, H * W)
    out = gemi_conv_agg(x_flat, w, b, K, Cin, Cout,
                        compute_dtype=compute_dtype, out_dtype=out_dtype)

    KC = K * Cout
    siam = out[:, :KC, :].reshape(B, K, Cout, H, W).astype(jnp.float32)
    aggd = out[:, KC:, :].reshape(B, K, Cout, H, W).astype(jnp.float32)

    # Symmetrize (spatial permutations) + final add stay in plain JAX so XLA
    # fuses them into one memory pass (no extra Pallas launch).
    symm = jnp.stack(
        [symmetrize(aggd[:, k], list_symmetry_groups[k]) for k in range(K)],
        axis=1)
    return siam + symm


# ---------------------------------------------------------------------------
# Pure-JAX reference for verification
# ---------------------------------------------------------------------------
def gemi_layer_reference(x, params, groups=("rot90", "hflip")):
    B, K, Cin, H, W = x.shape
    w1, b1, w2, b2 = params
    siam = jnp.stack(
        [jnp.einsum("bchw,cd->bdhw", x[:, k], w1[k])
         + b1[k][None, :, None, None] for k in range(K)], axis=1)
    agg = jnp.stack(
        [jnp.einsum("bchw,cd->bdhw", x[:, k], w2[k])
         + b2[k][None, :, None, None] for k in range(K)], axis=1)
    agg_sum = jnp.sum(agg, axis=1, keepdims=True) - agg
    symm = jnp.stack(
        [symmetrize(agg_sum[:, k], groups[k]) for k in range(K)], axis=1)
    return siam + symm


# ---------------------------------------------------------------------------
if __name__ == "__main__":
    B, K, Cin, Cout, H, W = 2, 2, 4, 8, 16, 16   # K == len(symmetry groups)

    key = jax.random.PRNGKey(0)
    kx, kw1, kb1, kw2, kb2 = jax.random.split(key, 5)

    x = jax.random.normal(kx, (B, K, Cin, H, W), dtype=jnp.float32)
    # Deterministic 1x1-conv ("conv block") operator parameters, one per view.
    w1 = jax.random.normal(kw1, (K, Cin, Cout), dtype=jnp.float32) * 0.1
    b1 = jax.random.normal(kb1, (K, Cout), dtype=jnp.float32) * 0.1
    w2 = jax.random.normal(kw2, (K, Cin, Cout), dtype=jnp.float32) * 0.1
    b2 = jax.random.normal(kb2, (K, Cout), dtype=jnp.float32) * 0.1
    params = (w1, b1, w2, b2)

    fwd = jax.jit(gemi_layer_forward,
                  static_argnames=("list_symmetry_groups", "compute_dtype",
                                   "out_dtype"))

    # Main check (f32 everywhere).
    out = jax.block_until_ready(fwd(x, params))
    ref = gemi_layer_reference(x, params)
    assert out.shape == (B, K, Cout, H, W)
    assert jnp.allclose(out, ref, atol=1e-5, rtol=1e-5), "mismatch vs reference"

    # Non-128-multiple spatial size + B=1: exercises HW padding (lane-dense
    # stores) and the >=2-parallel-programs guard for v7x megacore.
    x2 = jax.random.normal(jax.random.PRNGKey(1), (1, K, Cin, 12, 12),
                           dtype=jnp.float32)
    out2 = jax.block_until_ready(fwd(x2, params))
    ref2 = gemi_layer_reference(x2, params)
    assert out2.shape == (1, K, Cout, 12, 12)
    assert jnp.allclose(out2, ref2, atol=1e-5, rtol=1e-5), "padded-HW mismatch"

    # bf16 MXU-operand path (in-kernel cast, f32 accumulation, f32 outputs):
    # only operand-rounding error vs the f32 reference is expected.
    out_bf = jax.block_until_ready(fwd(x, params, compute_dtype=jnp.bfloat16))
    assert out_bf.shape == out.shape
    assert bool(jnp.isfinite(out_bf).all())
    assert float(jnp.max(jnp.abs(out_bf - ref))) < 0.25, "bf16 sanity check"

    print("KERNEL_OK")
</pallas_src>

<mosaic_0001>
module attributes {stable_mosaic.version = 11 : i64} {
  func.func @_gemi_fused_kernel(%arg0: i32, %arg1: i32, %arg2: memref<1x8x256xf32, #tpu.memory_space<vmem>>, %arg3: memref<2x16x4xf32, #tpu.memory_space<vmem>>, %arg4: memref<2x16x1xf32, #tpu.memory_space<vmem>>, %arg5: memref<1x32x256xf32, #tpu.memory_space<vmem>>) attributes {dimension_semantics = [#tpu.dimension_semantics<parallel>, #tpu.dimension_semantics<parallel>], iteration_bounds = array<i64: 2, 1>, scalar_prefetch = 0 : i64, scratch_operands = 0 : i64, tpu.core_type = #tpu.core_type<tc>, window_params = [{transform_indices = @transform_0, window_bounds = array<i64: 1, 8, 256>}, {pipeline_mode = #tpu.pipeline_mode<synchronous>, transform_indices = @transform_1, window_bounds = array<i64: 2, 16, 4>}, {pipeline_mode = #tpu.pipeline_mode<synchronous>, transform_indices = @transform_2, window_bounds = array<i64: 2, 16, 1>}, {transform_indices = @transform_3, window_bounds = array<i64: 1, 32, 256>}]} {
    %c0 = arith.constant 0 : index
    %c0_0 = arith.constant 0 : index
    %c0_1 = arith.constant 0 : index
    %0 = vector.load %arg2[%c0, %c0_0, %c0_1] : memref<1x8x256xf32, #tpu.memory_space<vmem>>, vector<1x8x256xf32>
    %1 = vector.shape_cast %0 : vector<1x8x256xf32> to vector<8x256xf32>
    %c0_2 = arith.constant 0 : index
    %c0_3 = arith.constant 0 : index
    %c0_4 = arith.constant 0 : index
    %2 = vector.load %arg3[%c0_2, %c0_3, %c0_4] : memref<2x16x4xf32, #tpu.memory_space<vmem>>, vector<1x16x4xf32>
    %3 = vector.shape_cast %2 : vector<1x16x4xf32> to vector<16x4xf32>
    %4 = vector.extract_strided_slice %1 {offsets = [0, 0], sizes = [4, 256], strides = [1, 1]} : vector<8x256xf32> to vector<4x256xf32>
    %cst = arith.constant dense<0.000000e+00> : vector<16x256xf32>
    %5 = tpu.matmul %3, %4, %cst {dimension_numbers = #tpu.dot_dimension_numbers<[1], [0], [0], [1], [0, 0, 1, 1], [], []>} : vector<16x4xf32>, vector<4x256xf32>, vector<16x256xf32> -> vector<16x256xf32>
    %c0_5 = arith.constant 0 : index
    %c0_6 = arith.constant 0 : index
    %c0_7 = arith.constant 0 : index
    %6 = vector.load %arg4[%c0_5, %c0_6, %c0_7] : memref<2x16x1xf32, #tpu.memory_space<vmem>>, vector<1x16x1xf32>
    %7 = vector.shape_cast %6 : vector<1x16x1xf32> to vector<16x1xf32>
    %8 = vector.broadcast %7 : vector<16x1xf32> to vector<16x256xf32>
    %9 = arith.addf %5, %8 : vector<16x256xf32>
    %10 = vector.extract_strided_slice %9 {offsets = [0, 0], sizes = [8, 256], strides = [1, 1]} : vector<16x256xf32> to vector<8x256xf32>
    %11 = vector.extract_strided_slice %9 {offsets = [8, 0], sizes = [8, 256], strides = [1, 1]} : vector<16x256xf32> to vector<8x256xf32>
    %c1 = arith.constant 1 : index
    %c0_8 = arith.constant 0 : index
    %c0_9 = arith.constant 0 : index
    %12 = vector.load %arg3[%c1, %c0_8, %c0_9] : memref<2x16x4xf32, #tpu.memory_space<vmem>>, vector<1x16x4xf32>
    %13 = vector.shape_cast %12 : vector<1x16x4xf32> to vector<16x4xf32>
    %14 = vector.extract_strided_slice %1 {offsets = [4, 0], sizes = [4, 256], strides = [1, 1]} : vector<8x256xf32> to vector<4x256xf32>
    %cst_10 = arith.constant dense<0.000000e+00> : vector<16x256xf32>
    %15 = tpu.matmul %13, %14, %cst_10 {dimension_numbers = #tpu.dot_dimension_numbers<[1], [0], [0], [1], [0, 0, 1, 1], [], []>} : vector<16x4xf32>, vector<4x256xf32>, vector<16x256xf32> -> vector<16x256xf32>
    %c1_11 = arith.constant 1 : index
    %c0_12 = arith.constant 0 : index
    %c0_13 = arith.constant 0 : index
    %16 = vector.load %arg4[%c1_11, %c0_12, %c0_13] : memref<2x16x1xf32, #tpu.memory_space<vmem>>, vector<1x16x1xf32>
    %17 = vector.shape_cast %16 : vector<1x16x1xf32> to vector<16x1xf32>
    %18 = vector.broadcast %17 : vector<16x1xf32> to vector<16x256xf32>
    %19 = arith.addf %15, %18 : vector<16x256xf32>
    %20 = vector.extract_strided_slice %19 {offsets = [0, 0], sizes = [8, 256], strides = [1, 1]} : vector<16x256xf32> to vector<8x256xf32>
    %21 = vector.extract_strided_slice %19 {offsets = [8, 0], sizes = [8, 256], strides = [1, 1]} : vector<16x256xf32> to vector<8x256xf32>
    %c0_14 = arith.constant 0 : index
    %c0_15 = arith.constant 0 : index
    %c0_16 = arith.constant 0 : index
    %22 = vector.load %arg5[%c0_14, %c0_15, %c0_16] : memref<1x32x256xf32, #tpu.memory_space<vmem>>, vector<1x8x256xf32>
    %23 = vector.shape_cast %22 : vector<1x8x256xf32> to vector<8x256xf32>
    %24 = vector.shape_cast %10 : vector<8x256xf32> to vector<1x8x256xf32>
    tpu.vector_store %arg5[%c0_14, %c0_15, %c0_16], %24 {strides = array<i32>} : memref<1x32x256xf32, #tpu.memory_space<vmem>>, vector<1x8x256xf32>,
    %c0_17 = arith.constant 0 : index
    %c8 = arith.constant 8 : index
    %c0_18 = arith.constant 0 : index
    %25 = vector.load %arg5[%c0_17, %c8, %c0_18] : memref<1x32x256xf32, #tpu.memory_space<vmem>>, vector<1x8x256xf32>
    %26 = vector.shape_cast %25 : vector<1x8x256xf32> to vector<8x256xf32>
    %27 = vector.shape_cast %20 : vector<8x256xf32> to vector<1x8x256xf32>
    tpu.vector_store %arg5[%c0_17, %c8, %c0_18], %27 {strides = array<i32>} : memref<1x32x256xf32, #tpu.memory_space<vmem>>, vector<1x8x256xf32>,
    %c0_19 = arith.constant 0 : index
    %c16 = arith.constant 16 : index
    %c0_20 = arith.constant 0 : index
    %28 = vector.load %arg5[%c0_19, %c16, %c0_20] : memref<1x32x256xf32, #tpu.memory_space<vmem>>, vector<1x8x256xf32>
    %29 = vector.shape_cast %28 : vector<1x8x256xf32> to vector<8x256xf32>
    %30 = vector.shape_cast %21 : vector<8x256xf32> to vector<1x8x256xf32>
    tpu.vector_store %arg5[%c0_19, %c16, %c0_20], %30 {strides = array<i32>} : memref<1x32x256xf32, #tpu.memory_space<vmem>>, vector<1x8x256xf32>,
    %c0_21 = arith.constant 0 : index
    %c24 = arith.constant 24 : index
    %c0_22 = arith.constant 0 : index
    %31 = vector.load %arg5[%c0_21, %c24, %c0_22] : memref<1x32x256xf32, #tpu.memory_space<vmem>>, vector<1x8x256xf32>
    %32 = vector.shape_cast %31 : vector<1x8x256xf32> to vector<8x256xf32>
    %33 = vector.shape_cast %11 : vector<8x256xf32> to vector<1x8x256xf32>
    tpu.vector_store %arg5[%c0_21, %c24, %c0_22], %33 {strides = array<i32>} : memref<1x32x256xf32, #tpu.memory_space<vmem>>, vector<1x8x256xf32>,
    return
  }
  func.func @transform_0(%arg0: i32, %arg1: i32) -> (i32, i32, i32) {
    %c0_i32 = arith.constant 0 : i32
    %c0_i32_0 = arith.constant 0 : i32
    return %arg0, %c0_i32, %arg1 : i32, i32, i32
  }
  func.func @transform_1(%arg0: i32, %arg1: i32) -> (i32, i32, i32) {
    %c0_i32 = arith.constant 0 : i32
    %c0_i32_0 = arith.constant 0 : i32
    %c0_i32_1 = arith.constant 0 : i32
    %c0_i32_2 = arith.constant 0 : i32
    return %c0_i32, %c0_i32_0, %c0_i32_1 : i32, i32, i32
  }
  func.func @transform_2(%arg0: i32, %arg1: i32) -> (i32, i32, i32) {
    %c0_i32 = arith.constant 0 : i32
    %c0_i32_0 = arith.constant 0 : i32
    %c0_i32_1 = arith.constant 0 : i32
    %c0_i32_2 = arith.constant 0 : i32
    return %c0_i32, %c0_i32_0, %c0_i32_1 : i32, i32, i32
  }
  func.func @transform_3(%arg0: i32, %arg1: i32) -> (i32, i32, i32) {
    %c0_i32 = arith.constant 0 : i32
    %c0_i32_0 = arith.constant 0 : i32
    return %arg0, %c0_i32, %arg1 : i32, i32, i32
  }
}

</mosaic_0001>

<bundles_post_ra>
// kernel: gemi_layer_forward.1
= control target key start
LH: loop header
LB: loop body
LE: loop exit
PB: predicated region body
PF: predicated region fallthrough
CT: control target
= control target key end

     0   :  { %s556_s12 = smov 0   ;;  %s558_s13 = smov 0   ;;  %s629_s0 = inlined_call_operand.vmem [shape: f32[2,8,256], index: 0, kind: input, shape index: {}]   ;;  %s630_s1 = inlined_call_operand.vmem [shape: f32[2,16,4], index: 1, kind: input, shape index: {}]   ;;  %s631_s2 = inlined_call_operand.vmem [shape: f32[2,16,1], index: 2, kind: input, shape index: {}]   ;;  %s632_s3 = inlined_call_operand.vmem [shape: f32[2,32,256], index: 3, kind: output, shape index: {}]  }
   0x1   :  { %s560_s14 = smov 0  }
   0x2 LB: > { %s25_s15 = sadd.s32 1, %s529_s13  ;;  %p459_p0 = scmp.ge.s32.totalorder %s533_s14, 1  ;;  %s533_s14 = sphi %s560_s14, %s13_s14   ;;  %s529_s13 = sphi %s558_s13, %s634_s13   ;;  %s525_s12 = sphi %s556_s12, %s633_s12  }
   0x3   : > { %p27_p1 = scmp.ge.s32.totalorder %s25_s15, 2  ;;  %p158_p2 = scmp.lt.s32.totalorder %s533_s14, 3 }
   0x5   : > { %s636_s15 = smov (%p27_p1, %s25_s15), 0  ;;  %p159_p3 = pnand %p459_p0, %p158_p2 }
   0x6   : > { %p191_p4 = scmp.lt.s32.totalorder (!%p159_p3), %s525_s12, 1 }
   0x7   : > { %162 = sbr.rel (%p159_p3) target bundleno = 164 (0xa4), region = 32 }
   0xc   : > { %v472_v0 = vld [vmem:[%s631_s2 + $0x10] sm:$0xff]  ;;  %v214_v1 = vld [vmem:[%s631_s2] sm:$0xff]  ;;  %s638_s12 = smov (!%p191_p4, %s525_s12), 1  ;;  %v535_v2 = vmov 0   ;;  %vm233_vm0 = vcmask 1043456   ;;  %vm226_vm1 = vcmask 31744  }
   0xd   : > { %510 = vset.pattern.permute.xlu1 %v535_v2  ;;  %509 = vset.pattern.permute.xlu0 %v535_v2  ;;  %s482_s20 = sshll.u32 %s638_s12, 4  ;;  %v212_v3 = vld [vmem:[%s630_s1] sm:$0xff]  ;;  %v470_v8 = vld [vmem:[%s630_s1 + $0x10] sm:$0xff]  ;;  %v473_v9 = vld [vmem:[%s631_s2 + $0x18] sm:$0xff]  ;;  %s483_s9 = sshll.u32 %s638_s12, 6 }
   0xe   : > { %294 = vperm.xlu1 %510, %v472_v0   ;;  %218 = vperm.xlu0 %509, %v214_v1   ;;  %s198_s23 = scalar_lea.vmem %s629_s0, %s482_s20  ;;  %v215_v10 = vld [vmem:[%s631_s2 + $0x8] sm:$0xff]  ;;  %v471_v12 = vld [vmem:[%s630_s1 + $0x18] sm:$0xff]  ;;  %s208_s16 = scalar_lea.vmem %s632_s3, %s483_s9 }
   0xf   : > { %v210_v4 = vld [vmem:[%s198_s23] sm:$0xff]  ;;  %v211_v5 = vld [vmem:[%s198_s23 + $0x8] sm:$0xff] }
  0x10   : > { %464 = vmatpush.msk.msra.mxu0 %vm233_vm0, %v210_v4  ;;  %467 = vmatpush.msk.msra.mxu1 %vm233_vm0, %v211_v5  ;;  %v302_v6 = vrot.slane %v210_v4, 4  ;;  %v303_v7 = vrot.slane %v211_v5, 4  ;;  %v213_v11 = vld [vmem:[%s630_s1 + $0x8] sm:$0xff] }
  0x11   : > { %465 = vmatmul.msk.f32.vlgmr.msra.gmra.mxu0 %vm226_vm1, %v212_v3  ;;  %468 = vmatmul.msk.f32.vlgmr.msra.gmra.mxu1 %vm226_vm1, %v212_v3 }
  0x12   : > { %474 = vmatpush.msk.msra.mxu2 %vm233_vm0, %v302_v6  ;;  %477 = vmatpush.msk.msra.mxu3 %vm233_vm0, %v303_v7 }
  0x13   : > { %475 = vmatmul.msk.f32.vlgmr.msra.gmra.mxu2 %vm226_vm1, %v470_v8  ;;  %478 = vmatmul.msk.f32.vlgmr.msra.gmra.mxu3 %vm226_vm1, %v470_v8 }
  0x16   : > { %299 = vperm.xlu1 %510, %v473_v9   ;;  %223 = vperm.xlu0 %509, %v215_v10  }
  0x19   : > { %466 = vmatmul.msk.f32.gmra.mxu0 %vm226_vm1, %v213_v11  ;;  %469 = vmatmul.msk.f32.gmra.mxu1 %vm226_vm1, %v213_v11 }
  0x1b   : > { %476 = vmatmul.msk.f32.gmra.mxu2 %vm226_vm1, %v471_v12  ;;  %479 = vmatmul.msk.f32.gmra.mxu3 %vm226_vm1, %v471_v12 }
  0x80   : > { %v219_v13 = vpop.permute.xlu0 %218  ;;  %v295_v18 = vpop.permute.xlu1 %294 }
  0x88   : > { %v224_v19 = vpop.permute.xlu0 %223  ;;  %v300_v28 = vpop.permute.xlu1 %299 }
  0x8e   : > { %v257_v14 = vpop.f32.mrf.mxu0  ;;  %v280_v15 = vpop.f32.mrf.mxu1 }
  0x8f   : > { %v258_v16 = vadd.f32 %v257_v14, %v219_v13  ;;  %v281_v17 = vadd.f32 %v280_v15, %v219_v13 }
  0x91   : > { %360 = vst [vmem:[%s208_s16] sm:$0xff] %v258_v16 }
  0x92   : > { %361 = vst [vmem:[%s208_s16 + $0x8] sm:$0xff] %v281_v17 }
  0x96   : > { %v260_v20 = vpop.f32.mrf.mxu0  ;;  %v283_v21 = vpop.f32.mrf.mxu1 }
  0x97   : > { %v261_v22 = vadd.f32 %v260_v20, %v224_v19  ;;  %v284_v23 = vadd.f32 %v283_v21, %v224_v19  ;;  %v331_v24 = vpop.f32.mrf.mxu2  ;;  %v354_v25 = vpop.f32.mrf.mxu3 }
  0x98   : > { %v332_v26 = vadd.f32 %v331_v24, %v295_v18  ;;  %v355_v27 = vadd.f32 %v354_v25, %v295_v18 }
  0x99   : > { %366 = vst [vmem:[%s208_s16 + $0x30] sm:$0xff] %v261_v22 }
  0x9a   : > { %367 = vst [vmem:[%s208_s16 + $0x38] sm:$0xff] %v284_v23 }
  0x9b   : > { %362 = vst [vmem:[%s208_s16 + $0x10] sm:$0xff] %v332_v26 }
  0x9c   : > { %363 = vst [vmem:[%s208_s16 + $0x18] sm:$0xff] %v355_v27 }
  0x9f   : > { %v334_v29 = vpop.f32.mrf.mxu2  ;;  %v357_v30 = vpop.f32.mrf.mxu3 }
  0xa0   : > { %v335_v31 = vadd.f32 %v334_v29, %v300_v28  ;;  %v358_v32 = vadd.f32 %v357_v30, %v300_v28 }
  0xa2   : > { %364 = vst [vmem:[%s208_s16 + $0x20] sm:$0xff] %v335_v31 }
  0xa3   : > { %365 = vst [vmem:[%s208_s16 + $0x28] sm:$0xff] %v358_v32 }
  0xa4 PF: > { %s13_s14 = sadd.s32 1, %s533_s14   ;;  %s633_s12 = smov %s529_s13 }
  0xa5   : > { %p10_p5 = scmp.ge.s32.totalorder %s13_s14, 4   ;;  %s634_s13 = smov %s636_s15 }
  0xa7   :  { %12 = sbr.rel (!%p10_p5) target bundleno = 2 (0x2), region = 64 }

</bundles_post_ra>
